<compile_context>
chip_gen: v5e
topology: v5e:2x2
jax: 0.10.0
libtpu: 0.0.40
codegen_flags: <defaults>
</compile_context>

<pallas_src>
import functools

import jax
import jax.numpy as jnp
from jax import lax
from jax.experimental import pallas as pl
from jax.experimental.pallas import tpu as pltpu


def _conv3x3_lrelu_kernel(x_ref, w_ref, b_ref, o_ref, *, tile_h, negative_slope):
    # x_ref: (1, H+2, W+2, Cin) zero-padded NHWC input for batch n
    #        (resident in VMEM across the row-tile grid axis)
    # w_ref: (9, Cin, Cout) spectrally-normalized taps, tap k = (dy, dx) = (k//3, k%3)
    # b_ref: (1, Cout)
    # o_ref: (1, tile_h, W, Cout)
    _, th, W, Cout = o_ref.shape
    Cin = x_ref.shape[-1]
    h0 = pl.program_id(1) * tile_h

    acc = jnp.zeros((th * W, Cout), jnp.float32)
    for dy in range(3):
        for dx in range(3):
            patch = x_ref[0, pl.ds(h0 + dy, th), pl.ds(dx, W), :]
            patch = patch.astype(jnp.float32).reshape(th * W, Cin)
            tap = w_ref[dy * 3 + dx].astype(jnp.float32)          # (Cin, Cout)
            acc = acc + jnp.dot(patch, tap, preferred_element_type=jnp.float32)

    acc = acc + b_ref[0, :].astype(jnp.float32)
    acc = jnp.where(acc >= 0.0, acc, negative_slope * acc)        # LeakyReLU(0.2)
    o_ref[0] = acc.reshape(th, W, Cout).astype(o_ref.dtype)


def _l2_normalize(v, eps=1e-12):
    return v / (jnp.sqrt(jnp.sum(v * v)) + eps)


def _spectral_normalize(weight, u, n_power_iterations=1, eps=1e-12):
    """Mirror torch.nn.utils.spectral_norm forward-time weight normalization."""
    cout = weight.shape[0]
    w_mat = weight.reshape(cout, -1).astype(jnp.float32)
    u0 = _l2_normalize(u.astype(jnp.float32), eps)

    def body(_, carry):
        uu, _ = carry
        vv = _l2_normalize(w_mat.T @ uu, eps)
        uu = _l2_normalize(w_mat @ vv, eps)
        return (uu, vv)

    u_f, v_f = lax.fori_loop(0, n_power_iterations, body,
                             (u0, jnp.zeros((w_mat.shape[1],), jnp.float32)))
    sigma = u_f @ (w_mat @ v_f)
    return (weight.astype(jnp.float32) / sigma).astype(weight.dtype)


def _choose_tile_h(H, W, Cout, itemsize, target_bytes=2 << 20):
    """Largest divisor of H whose output row-tile stays under ~target_bytes."""
    row_bytes = max(1, W * Cout * itemsize)
    best = 1
    for th in range(1, H + 1):
        if H % th == 0 and th * row_bytes <= target_bytes:
            best = th
    return best


def constant_input_self(x, weight, bias, u, *, negative_slope=0.2, tile_h=None):
    """x: (N, C, H, W) NCHW; weight: (C, C, 3, 3); bias: (C,); u: (C,) SN power-iter state."""
    N, Cin, H, W = x.shape
    Cout = weight.shape[0]
    itemsize = jnp.dtype(x.dtype).itemsize

    # Spectral norm: tiny (Cout x Cin*9) power iteration -> plain JAX in the wrapper.
    w_sn = _spectral_normalize(weight, u)

    # NHWC layout (channels in the lane dim) + explicit zero padding for 'same' 3x3.
    x_nhwc = jnp.transpose(x, (0, 2, 3, 1))
    x_pad = jnp.pad(x_nhwc, ((0, 0), (1, 1), (1, 1), (0, 0)))
    w_taps = jnp.transpose(w_sn, (2, 3, 1, 0)).reshape(9, Cin, Cout)  # (ky*kx, Cin, Cout)
    b2 = bias.reshape(1, Cout)

    if tile_h is None:
        tile_h = _choose_tile_h(H, W, Cout, itemsize)
    assert H % tile_h == 0, "tile_h must divide H"
    grid = (N, H // tile_h)

    kernel = functools.partial(_conv3x3_lrelu_kernel,
                               tile_h=tile_h, negative_slope=negative_slope)

    total_out = N * H * W * Cout
    cost = pl.CostEstimate(
        flops=2 * total_out * Cin * 9,
        transcendentals=0,
        bytes_accessed=(x_pad.size + total_out) * itemsize + w_taps.size * 4,
    )

    out_nhwc = pl.pallas_call(
        kernel,
        out_shape=jax.ShapeDtypeStruct((N, H, W, Cout), x.dtype),
        grid_spec=pltpu.PrefetchScalarGridSpec(
            num_scalar_prefetch=0,
            grid=grid,
            in_specs=[
                # Whole padded image of batch n; block index depends only on the
                # batch axis -> stays resident in VMEM across the row-tile axis.
                pl.BlockSpec((1, H + 2, W + 2, Cin), lambda n, h: (n, 0, 0, 0)),
                pl.BlockSpec((9, Cin, Cout), lambda n, h: (0, 0, 0)),
                pl.BlockSpec((1, Cout), lambda n, h: (0, 0)),
            ],
            out_specs=pl.BlockSpec((1, tile_h, W, Cout),
                                   lambda n, h: (n, h, 0, 0)),
        ),
        compiler_params=pltpu.CompilerParams(
            dimension_semantics=("parallel", "parallel")),
        cost_estimate=cost,
    )(x_pad, w_taps, b2)

    # Back to PyTorch's NCHW.
    return jnp.transpose(out_nhwc, (0, 3, 1, 2))


if __name__ == "__main__":
    key = jax.random.PRNGKey(0)
    k_x, k_w, k_b, k_u = jax.random.split(key, 4)

    N, C, H, W = 2, 4, 16, 16
    x = jax.random.normal(k_x, (N, C, H, W), dtype=jnp.float32)

    # Conv2d(C, C, 3) parameters (deterministic, roughly torch-scale init).
    fan_in = C * 9
    bound = 1.0 / (fan_in ** 0.5)
    weight = jax.random.uniform(k_w, (C, C, 3, 3), jnp.float32, -bound, bound)
    bias = jax.random.uniform(k_b, (C,), jnp.float32, -bound, bound)
    u = jax.random.normal(k_u, (C,), dtype=jnp.float32)  # spectral-norm power-iter state

    out = constant_input_self(x, weight, bias, u, tile_h=8)
    jax.block_until_ready(out)

    # Plain-JAX reference (same spectral normalization path).
    w_sn = _spectral_normalize(weight, u)
    ref = lax.conv_general_dilated(
        x, w_sn, window_strides=(1, 1), padding=((1, 1), (1, 1)),
        dimension_numbers=("NCHW", "OIHW", "NCHW"),
        precision=lax.Precision.HIGHEST) + bias.reshape(1, C, 1, 1)
    ref = jnp.where(ref >= 0.0, ref, 0.2 * ref)

    assert out.shape == (N, C, H, W)
    assert jnp.allclose(out, ref, atol=1e-4, rtol=1e-4), \
        float(jnp.max(jnp.abs(out - ref)))

    print("KERNEL_OK")
</pallas_src>

<mosaic_0001>
module attributes {stable_mosaic.version = 11 : i64} {
  func.func @_conv3x3_lrelu_kernel(%arg0: i32, %arg1: i32, %arg2: memref<1x18x18x4xf32, #tpu.memory_space<vmem>>, %arg3: memref<9x4x4xf32, #tpu.memory_space<vmem>>, %arg4: memref<1x4xf32, #tpu.memory_space<vmem>>, %arg5: memref<1x8x16x4xf32, #tpu.memory_space<vmem>>) attributes {dimension_semantics = [#tpu.dimension_semantics<parallel>, #tpu.dimension_semantics<parallel>], iteration_bounds = array<i64: 2, 2>, scalar_prefetch = 0 : i64, scratch_operands = 0 : i64, tpu.core_type = #tpu.core_type<tc>, window_params = [{transform_indices = @transform_0, window_bounds = array<i64: 1, 18, 18, 4>}, {pipeline_mode = #tpu.pipeline_mode<synchronous>, transform_indices = @transform_1, window_bounds = array<i64: 9, 4, 4>}, {pipeline_mode = #tpu.pipeline_mode<synchronous>, transform_indices = @transform_2, window_bounds = array<i64: 1, 4>}, {transform_indices = @transform_3, window_bounds = array<i64: 1, 8, 16, 4>}]} {
    %c8_i32 = arith.constant 8 : i32
    %0 = arith.muli %arg1, %c8_i32 : i32
    %cst = arith.constant 0.000000e+00 : f32
    %1 = vector.broadcast %cst : f32 to vector<128x4xf32>
    %c0_i32 = arith.constant 0 : i32
    %2 = arith.addi %0, %c0_i32 : i32
    %c0 = arith.constant 0 : index
    %3 = arith.index_cast %2 : i32 to index
    %c0_0 = arith.constant 0 : index
    %c0_1 = arith.constant 0 : index
    %4 = vector.load %arg2[%c0, %3, %c0_0, %c0_1] : memref<1x18x18x4xf32, #tpu.memory_space<vmem>>, vector<1x8x16x4xf32>
    %5 = vector.shape_cast %4 : vector<1x8x16x4xf32> to vector<8x16x4xf32>
    %6 = vector.shape_cast %5 : vector<8x16x4xf32> to vector<128x4xf32>
    %c0_2 = arith.constant 0 : index
    %c0_3 = arith.constant 0 : index
    %c0_4 = arith.constant 0 : index
    %7 = vector.load %arg3[%c0_2, %c0_3, %c0_4] : memref<9x4x4xf32, #tpu.memory_space<vmem>>, vector<1x4x4xf32>
    %8 = vector.shape_cast %7 : vector<1x4x4xf32> to vector<4x4xf32>
    %cst_5 = arith.constant dense<0.000000e+00> : vector<128x4xf32>
    %9 = tpu.matmul %6, %8, %cst_5 {dimension_numbers = #tpu.dot_dimension_numbers<[1], [0], [0], [1], [0, 0, 1, 1], [], []>} : vector<128x4xf32>, vector<4x4xf32>, vector<128x4xf32> -> vector<128x4xf32>
    %10 = arith.addf %1, %9 : vector<128x4xf32>
    %c0_i32_6 = arith.constant 0 : i32
    %11 = arith.addi %0, %c0_i32_6 : i32
    %c0_7 = arith.constant 0 : index
    %12 = arith.index_cast %11 : i32 to index
    %c1 = arith.constant 1 : index
    %c0_8 = arith.constant 0 : index
    %13 = vector.load %arg2[%c0_7, %12, %c1, %c0_8] : memref<1x18x18x4xf32, #tpu.memory_space<vmem>>, vector<1x8x16x4xf32>
    %14 = vector.shape_cast %13 : vector<1x8x16x4xf32> to vector<8x16x4xf32>
    %15 = vector.shape_cast %14 : vector<8x16x4xf32> to vector<128x4xf32>
    %c1_9 = arith.constant 1 : index
    %c0_10 = arith.constant 0 : index
    %c0_11 = arith.constant 0 : index
    %16 = vector.load %arg3[%c1_9, %c0_10, %c0_11] : memref<9x4x4xf32, #tpu.memory_space<vmem>>, vector<1x4x4xf32>
    %17 = vector.shape_cast %16 : vector<1x4x4xf32> to vector<4x4xf32>
    %cst_12 = arith.constant dense<0.000000e+00> : vector<128x4xf32>
    %18 = tpu.matmul %15, %17, %cst_12 {dimension_numbers = #tpu.dot_dimension_numbers<[1], [0], [0], [1], [0, 0, 1, 1], [], []>} : vector<128x4xf32>, vector<4x4xf32>, vector<128x4xf32> -> vector<128x4xf32>
    %19 = arith.addf %10, %18 : vector<128x4xf32>
    %c0_i32_13 = arith.constant 0 : i32
    %20 = arith.addi %0, %c0_i32_13 : i32
    %c0_14 = arith.constant 0 : index
    %21 = arith.index_cast %20 : i32 to index
    %c2 = arith.constant 2 : index
    %c0_15 = arith.constant 0 : index
    %22 = vector.load %arg2[%c0_14, %21, %c2, %c0_15] : memref<1x18x18x4xf32, #tpu.memory_space<vmem>>, vector<1x8x16x4xf32>
    %23 = vector.shape_cast %22 : vector<1x8x16x4xf32> to vector<8x16x4xf32>
    %24 = vector.shape_cast %23 : vector<8x16x4xf32> to vector<128x4xf32>
    %c2_16 = arith.constant 2 : index
    %c0_17 = arith.constant 0 : index
    %c0_18 = arith.constant 0 : index
    %25 = vector.load %arg3[%c2_16, %c0_17, %c0_18] : memref<9x4x4xf32, #tpu.memory_space<vmem>>, vector<1x4x4xf32>
    %26 = vector.shape_cast %25 : vector<1x4x4xf32> to vector<4x4xf32>
    %cst_19 = arith.constant dense<0.000000e+00> : vector<128x4xf32>
    %27 = tpu.matmul %24, %26, %cst_19 {dimension_numbers = #tpu.dot_dimension_numbers<[1], [0], [0], [1], [0, 0, 1, 1], [], []>} : vector<128x4xf32>, vector<4x4xf32>, vector<128x4xf32> -> vector<128x4xf32>
    %28 = arith.addf %19, %27 : vector<128x4xf32>
    %c1_i32 = arith.constant 1 : i32
    %29 = arith.addi %0, %c1_i32 : i32
    %c0_20 = arith.constant 0 : index
    %30 = arith.index_cast %29 : i32 to index
    %c0_21 = arith.constant 0 : index
    %c0_22 = arith.constant 0 : index
    %31 = vector.load %arg2[%c0_20, %30, %c0_21, %c0_22] : memref<1x18x18x4xf32, #tpu.memory_space<vmem>>, vector<1x8x16x4xf32>
    %32 = vector.shape_cast %31 : vector<1x8x16x4xf32> to vector<8x16x4xf32>
    %33 = vector.shape_cast %32 : vector<8x16x4xf32> to vector<128x4xf32>
    %c3 = arith.constant 3 : index
    %c0_23 = arith.constant 0 : index
    %c0_24 = arith.constant 0 : index
    %34 = vector.load %arg3[%c3, %c0_23, %c0_24] : memref<9x4x4xf32, #tpu.memory_space<vmem>>, vector<1x4x4xf32>
    %35 = vector.shape_cast %34 : vector<1x4x4xf32> to vector<4x4xf32>
    %cst_25 = arith.constant dense<0.000000e+00> : vector<128x4xf32>
    %36 = tpu.matmul %33, %35, %cst_25 {dimension_numbers = #tpu.dot_dimension_numbers<[1], [0], [0], [1], [0, 0, 1, 1], [], []>} : vector<128x4xf32>, vector<4x4xf32>, vector<128x4xf32> -> vector<128x4xf32>
    %37 = arith.addf %28, %36 : vector<128x4xf32>
    %c1_i32_26 = arith.constant 1 : i32
    %38 = arith.addi %0, %c1_i32_26 : i32
    %c0_27 = arith.constant 0 : index
    %39 = arith.index_cast %38 : i32 to index
    %c1_28 = arith.constant 1 : index
    %c0_29 = arith.constant 0 : index
    %40 = vector.load %arg2[%c0_27, %39, %c1_28, %c0_29] : memref<1x18x18x4xf32, #tpu.memory_space<vmem>>, vector<1x8x16x4xf32>
    %41 = vector.shape_cast %40 : vector<1x8x16x4xf32> to vector<8x16x4xf32>
    %42 = vector.shape_cast %41 : vector<8x16x4xf32> to vector<128x4xf32>
    %c4 = arith.constant 4 : index
    %c0_30 = arith.constant 0 : index
    %c0_31 = arith.constant 0 : index
    %43 = vector.load %arg3[%c4, %c0_30, %c0_31] : memref<9x4x4xf32, #tpu.memory_space<vmem>>, vector<1x4x4xf32>
    %44 = vector.shape_cast %43 : vector<1x4x4xf32> to vector<4x4xf32>
    %cst_32 = arith.constant dense<0.000000e+00> : vector<128x4xf32>
    %45 = tpu.matmul %42, %44, %cst_32 {dimension_numbers = #tpu.dot_dimension_numbers<[1], [0], [0], [1], [0, 0, 1, 1], [], []>} : vector<128x4xf32>, vector<4x4xf32>, vector<128x4xf32> -> vector<128x4xf32>
    %46 = arith.addf %37, %45 : vector<128x4xf32>
    %c1_i32_33 = arith.constant 1 : i32
    %47 = arith.addi %0, %c1_i32_33 : i32
    %c0_34 = arith.constant 0 : index
    %48 = arith.index_cast %47 : i32 to index
    %c2_35 = arith.constant 2 : index
    %c0_36 = arith.constant 0 : index
    %49 = vector.load %arg2[%c0_34, %48, %c2_35, %c0_36] : memref<1x18x18x4xf32, #tpu.memory_space<vmem>>, vector<1x8x16x4xf32>
    %50 = vector.shape_cast %49 : vector<1x8x16x4xf32> to vector<8x16x4xf32>
    %51 = vector.shape_cast %50 : vector<8x16x4xf32> to vector<128x4xf32>
    %c5 = arith.constant 5 : index
    %c0_37 = arith.constant 0 : index
    %c0_38 = arith.constant 0 : index
    %52 = vector.load %arg3[%c5, %c0_37, %c0_38] : memref<9x4x4xf32, #tpu.memory_space<vmem>>, vector<1x4x4xf32>
    %53 = vector.shape_cast %52 : vector<1x4x4xf32> to vector<4x4xf32>
    %cst_39 = arith.constant dense<0.000000e+00> : vector<128x4xf32>
    %54 = tpu.matmul %51, %53, %cst_39 {dimension_numbers = #tpu.dot_dimension_numbers<[1], [0], [0], [1], [0, 0, 1, 1], [], []>} : vector<128x4xf32>, vector<4x4xf32>, vector<128x4xf32> -> vector<128x4xf32>
    %55 = arith.addf %46, %54 : vector<128x4xf32>
    %c2_i32 = arith.constant 2 : i32
    %56 = arith.addi %0, %c2_i32 : i32
    %c0_40 = arith.constant 0 : index
    %57 = arith.index_cast %56 : i32 to index
    %c0_41 = arith.constant 0 : index
    %c0_42 = arith.constant 0 : index
    %58 = vector.load %arg2[%c0_40, %57, %c0_41, %c0_42] : memref<1x18x18x4xf32, #tpu.memory_space<vmem>>, vector<1x8x16x4xf32>
    %59 = vector.shape_cast %58 : vector<1x8x16x4xf32> to vector<8x16x4xf32>
    %60 = vector.shape_cast %59 : vector<8x16x4xf32> to vector<128x4xf32>
    %c6 = arith.constant 6 : index
    %c0_43 = arith.constant 0 : index
    %c0_44 = arith.constant 0 : index
    %61 = vector.load %arg3[%c6, %c0_43, %c0_44] : memref<9x4x4xf32, #tpu.memory_space<vmem>>, vector<1x4x4xf32>
    %62 = vector.shape_cast %61 : vector<1x4x4xf32> to vector<4x4xf32>
    %cst_45 = arith.constant dense<0.000000e+00> : vector<128x4xf32>
    %63 = tpu.matmul %60, %62, %cst_45 {dimension_numbers = #tpu.dot_dimension_numbers<[1], [0], [0], [1], [0, 0, 1, 1], [], []>} : vector<128x4xf32>, vector<4x4xf32>, vector<128x4xf32> -> vector<128x4xf32>
    %64 = arith.addf %55, %63 : vector<128x4xf32>
    %c2_i32_46 = arith.constant 2 : i32
    %65 = arith.addi %0, %c2_i32_46 : i32
    %c0_47 = arith.constant 0 : index
    %66 = arith.index_cast %65 : i32 to index
    %c1_48 = arith.constant 1 : index
    %c0_49 = arith.constant 0 : index
    %67 = vector.load %arg2[%c0_47, %66, %c1_48, %c0_49] : memref<1x18x18x4xf32, #tpu.memory_space<vmem>>, vector<1x8x16x4xf32>
    %68 = vector.shape_cast %67 : vector<1x8x16x4xf32> to vector<8x16x4xf32>
    %69 = vector.shape_cast %68 : vector<8x16x4xf32> to vector<128x4xf32>
    %c7 = arith.constant 7 : index
    %c0_50 = arith.constant 0 : index
    %c0_51 = arith.constant 0 : index
    %70 = vector.load %arg3[%c7, %c0_50, %c0_51] : memref<9x4x4xf32, #tpu.memory_space<vmem>>, vector<1x4x4xf32>
    %71 = vector.shape_cast %70 : vector<1x4x4xf32> to vector<4x4xf32>
    %cst_52 = arith.constant dense<0.000000e+00> : vector<128x4xf32>
    %72 = tpu.matmul %69, %71, %cst_52 {dimension_numbers = #tpu.dot_dimension_numbers<[1], [0], [0], [1], [0, 0, 1, 1], [], []>} : vector<128x4xf32>, vector<4x4xf32>, vector<128x4xf32> -> vector<128x4xf32>
    %73 = arith.addf %64, %72 : vector<128x4xf32>
    %c2_i32_53 = arith.constant 2 : i32
    %74 = arith.addi %0, %c2_i32_53 : i32
    %c0_54 = arith.constant 0 : index
    %75 = arith.index_cast %74 : i32 to index
    %c2_55 = arith.constant 2 : index
    %c0_56 = arith.constant 0 : index
    %76 = vector.load %arg2[%c0_54, %75, %c2_55, %c0_56] : memref<1x18x18x4xf32, #tpu.memory_space<vmem>>, vector<1x8x16x4xf32>
    %77 = vector.shape_cast %76 : vector<1x8x16x4xf32> to vector<8x16x4xf32>
    %78 = vector.shape_cast %77 : vector<8x16x4xf32> to vector<128x4xf32>
    %c8 = arith.constant 8 : index
    %c0_57 = arith.constant 0 : index
    %c0_58 = arith.constant 0 : index
    %79 = vector.load %arg3[%c8, %c0_57, %c0_58] : memref<9x4x4xf32, #tpu.memory_space<vmem>>, vector<1x4x4xf32>
    %80 = vector.shape_cast %79 : vector<1x4x4xf32> to vector<4x4xf32>
    %cst_59 = arith.constant dense<0.000000e+00> : vector<128x4xf32>
    %81 = tpu.matmul %78, %80, %cst_59 {dimension_numbers = #tpu.dot_dimension_numbers<[1], [0], [0], [1], [0, 0, 1, 1], [], []>} : vector<128x4xf32>, vector<4x4xf32>, vector<128x4xf32> -> vector<128x4xf32>
    %82 = arith.addf %73, %81 : vector<128x4xf32>
    %c0_60 = arith.constant 0 : index
    %c0_61 = arith.constant 0 : index
    %83 = vector.load %arg4[%c0_60, %c0_61] : memref<1x4xf32, #tpu.memory_space<vmem>>, vector<1x4xf32>
    %84 = vector.shape_cast %83 : vector<1x4xf32> to vector<4xf32>
    %85 = vector.shape_cast %84 : vector<4xf32> to vector<1x4xf32>
    %86 = vector.broadcast %85 : vector<1x4xf32> to vector<128x4xf32>
    %87 = arith.addf %82, %86 : vector<128x4xf32>
    %cst_62 = arith.constant 0.000000e+00 : f32
    %88 = vector.broadcast %cst_62 : f32 to vector<128x4xf32>
    %89 = arith.cmpf oge, %87, %88 : vector<128x4xf32>
    %cst_63 = arith.constant 2.000000e-01 : f32
    %90 = vector.broadcast %cst_63 : f32 to vector<128x4xf32>
    %91 = arith.mulf %90, %87 : vector<128x4xf32>
    %92 = arith.select %89, %87, %91 : vector<128x4xi1>, vector<128x4xf32>
    %93 = vector.shape_cast %92 : vector<128x4xf32> to vector<8x16x4xf32>
    %c0_64 = arith.constant 0 : index
    %c0_65 = arith.constant 0 : index
    %c0_66 = arith.constant 0 : index
    %c0_67 = arith.constant 0 : index
    %94 = vector.load %arg5[%c0_64, %c0_65, %c0_66, %c0_67] : memref<1x8x16x4xf32, #tpu.memory_space<vmem>>, vector<1x8x16x4xf32>
    %95 = vector.shape_cast %94 : vector<1x8x16x4xf32> to vector<8x16x4xf32>
    %96 = vector.shape_cast %93 : vector<8x16x4xf32> to vector<1x8x16x4xf32>
    tpu.vector_store %arg5[%c0_64, %c0_65, %c0_66, %c0_67], %96 {strides = array<i32>} : memref<1x8x16x4xf32, #tpu.memory_space<vmem>>, vector<1x8x16x4xf32>,
    return
  }
  func.func @transform_0(%arg0: i32, %arg1: i32) -> (i32, i32, i32, i32) {
    %c0_i32 = arith.constant 0 : i32
    %c0_i32_0 = arith.constant 0 : i32
    %c0_i32_1 = arith.constant 0 : i32
    %c0_i32_2 = arith.constant 0 : i32
    return %arg0, %c0_i32, %c0_i32_0, %c0_i32_1 : i32, i32, i32, i32
  }
  func.func @transform_1(%arg0: i32, %arg1: i32) -> (i32, i32, i32) {
    %c0_i32 = arith.constant 0 : i32
    %c0_i32_0 = arith.constant 0 : i32
    %c0_i32_1 = arith.constant 0 : i32
    %c0_i32_2 = arith.constant 0 : i32
    return %c0_i32, %c0_i32_0, %c0_i32_1 : i32, i32, i32
  }
  func.func @transform_2(%arg0: i32, %arg1: i32) -> (i32, i32) {
    %c0_i32 = arith.constant 0 : i32
    %c0_i32_0 = arith.constant 0 : i32
    %c0_i32_1 = arith.constant 0 : i32
    return %c0_i32, %c0_i32_0 : i32, i32
  }
  func.func @transform_3(%arg0: i32, %arg1: i32) -> (i32, i32, i32, i32) {
    %c0_i32 = arith.constant 0 : i32
    %c0_i32_0 = arith.constant 0 : i32
    %c0_i32_1 = arith.constant 0 : i32
    return %arg0, %arg1, %c0_i32, %c0_i32_0 : i32, i32, i32, i32
  }
}

</mosaic_0001>

<bundles_post_ra>
// kernel: tpu_custom_call.1
= control target key start
LH: loop header
LB: loop body
LE: loop exit
PB: predicated region body
PF: predicated region fallthrough
CT: control target
= control target key end

     0   :  { %s2088_s12 = smov 0   ;;  %s2090_s13 = smov 0   ;;  %s2735_s0 = inlined_call_operand.vmem [shape: f32[2,18,18,4], index: 0, kind: input, shape index: {}]   ;;  %s2736_s1 = inlined_call_operand.vmem [shape: f32[9,4,4], index: 1, kind: input, shape index: {}]   ;;  %s2737_s2 = inlined_call_operand.vmem [shape: f32[1,4], index: 2, kind: input, shape index: {}]   ;;  %s2738_s3 = inlined_call_operand.vmem [shape: f32[2,16,16,4], index: 3, kind: output, shape index: {}]  }
   0x1   :  { %s2092_s14 = smov 0   ;;  %s2094_s15 = smov 0  }
   0x2   :  { %s2096_s16 = smov 0  }
   0x3 LB: > { %s22_s17 = sadd.s32 1, %s2058_s14  ;;  %s25_s18 = sadd.s32 1, %s2062_s15  ;;  %s2066_s16 = sphi %s2096_s16, %s13_s16   ;;  %s2062_s15 = sphi %s2094_s15, %s2751_s15   ;;  %s2058_s14 = sphi %s2092_s14, %s2750_s14   ;;  %s2054_s13 = sphi %s2090_s13, %s2749_s13   ;;  %s2050_s12 = sphi %s2088_s12, %s2748_s12  }
   0x4   : > { %p23_p0 = scmp.ge.s32.totalorder %s22_s17, 2  ;;  %p1712_p1 = scmp.ge.s32.totalorder %s2066_s16, 1 }
   0x5   : > { %p151_p2 = scmp.lt.s32.totalorder %s2066_s16, 5 }
   0x6   : > { %s2753_s17 = smov (%p23_p0, %s22_s17), 0  ;;  %s2755_s18 = smov (!%p23_p0, %s25_s18), %s2062_s15 }
   0x7   : > { %p152_p3 = pnand %p1712_p1, %p151_p2  ;;  %p27_p4 = scmp.ge.s32.totalorder %s2755_s18, 2 }
   0x9   : > { %s2757_s18 = smov (%p27_p4, %s2755_s18), 0  ;;  %155 = sbr.rel (%p152_p3) target bundleno = 446 (0x1be), region = 32 }
   0xe   : > { %v1720_v0 = vld [vmem:[%s2736_s1 + $0x4] sm:$0xf]  ;;  %vm283_vm0 = vcmask 1043456   ;;  %p180_p5 = scmp.lt.s32.totalorder %s2054_s13, 1  ;;  %v1755_v1 = vld [vmem:[%s2736_s1 + $0x8] sm:$0xf] }
   0xf   : > { %1983 = vmatpush.msk.msra.mxu1 %vm283_vm0, %v1720_v0  ;;  %1984 = vmatpush.msk.msra.mxu2 %vm283_vm0, %v1720_v0  ;;  %v1791_v2 = vld [vmem:[%s2736_s1 + $0xc] sm:$0xf]  ;;  %v215_v3 = vld [vmem:[%s2736_s1] sm:$0xf]  ;;  %v1825_v4 = vld [vmem:[%s2736_s1 + $0x10] sm:$0xf] }
  0x10   : > { %s2759_s13 = smov (!%p180_p5, %s2054_s13), 1  ;;  %1985 = vmatpush.msk.msra.mxu3 %vm283_vm0, %v1720_v0  ;;  %s1719_s29 = smul.u32 192, %s2050_s12  ;;  %1721 = vmatpush.msk.msra.mxu0 %vm283_vm0, %v1720_v0  ;;  %vm234_vm1 = vcmask 31744   ;;  %v1895_v9 = vld [vmem:[%s2736_s1 + $0x18] sm:$0xf] }
  0x11   : > { %1756 = vmatpush.msk.msrb.mxu2 %vm283_vm0, %v1755_v1  ;;  %1738 = vmatpush.msk.msrb.mxu1 %vm283_vm0, %v215_v3  ;;  %s1986_s30 = smul.u32 432, %s2759_s13  ;;  %v1929_v12 = vld [vmem:[%s2736_s1 + $0x1c] sm:$0xf]  ;;  %v1859_v15 = vld [vmem:[%s2736_s1 + $0x14] sm:$0xf]  ;;  %s1714_s23 = sshll.u32 %s2050_s12, 3 }
  0x12   : > { %1792 = vmatpush.msk.msrb.mxu3 %vm283_vm0, %v1791_v2  ;;  %1826 = vmatpush.msk.msrb.mxu0 %vm283_vm0, %v1825_v4  ;;  %v1963_v16 = vld [vmem:[%s2736_s1 + $0x20] sm:$0xf]  ;;  %p188_p6 = scmp.lt.s32.totalorder %s1714_s23, 15  ;;  %s1716_s24 = sshll.u32 %s2759_s13, 5 }
  0x13   : > { %s184_s6 = scalar_lea.vmem %s2735_s0, %s1986_s30 }
  0x14   : > { %s2150_s7 = scalar_lea.vmem %s184_s6, %s1719_s29  ;;  %s2761_s23 = smov (!%p188_p6, %s1714_s23), 15 }
  0x15   : > { %v2153_v5 = vld [vmem:[%s2150_s7 + $0x31] sm:$0xff]  ;;  %v2156_v6 = vld [vmem:[%s2150_s7 + $0x61] sm:$0xff]  ;;  %v2173_v10 = vld [vmem:[%s2150_s7 + $0x39] sm:$0xff]  ;;  %s1715_s12 = sshll.u32 %s2761_s23, 1 }
  0x16   : > { %v2159_v7 = vld [vmem:[%s2150_s7 + $0x91] sm:$0xff]  ;;  %1726 = vmatmul.msk.f32.vlgmr.msra.gmra.mxu1 %vm234_vm1, %v2153_v5  ;;  %1730 = vmatmul.msk.f32.vlgmr.msra.gmra.mxu2 %vm234_vm1, %v2156_v6  ;;  %v216_v8 = vld [vmem:[%s2150_s7 + $0x1] sm:$0xff]  ;;  %v2176_v11 = vld [vmem:[%s2150_s7 + $0x69] sm:$0xff]  ;;  %s192_s25 = sadd.s32 %s1716_s24, %s1715_s12 }
  0x17   : > { %1734 = vmatmul.msk.f32.vlgmr.msra.gmra.mxu3 %vm234_vm1, %v2159_v7  ;;  %1722 = vmatmul.msk.f32.vlgmr.msra.gmra.mxu0 %vm234_vm1, %v216_v8  ;;  %v2183_v13 = vld [vmem:[%s2150_s7 + $0x99] sm:$0xff]  ;;  %v217_v14 = vld [vmem:[%s2150_s7 + $0x9] sm:$0xff]  ;;  %v2220_v21 = vld [vmem:[%s2150_s7 + $0x51] sm:$0xff]  ;;  %s1717_s28 = sshll.u32 %s192_s25, 3 }
  0x18   : > { %1896 = vmatpush.msk.msra.mxu2 %vm283_vm0, %v1895_v9  ;;  %1930 = vmatpush.msk.msra.mxu3 %vm283_vm0, %v1929_v12  ;;  %v2203_v17 = vld [vmem:[%s2150_s7 + $0x49] sm:$0xff]  ;;  %v2206_v18 = vld [vmem:[%s2150_s7 + $0x79] sm:$0xff]  ;;  %v2223_v22 = vld [vmem:[%s2150_s7 + $0x81] sm:$0xff]  ;;  %s2657_s30 = scalar_lea.vmem %s2738_s3, %s1717_s28 }
  0x19   : > { %1860 = vmatpush.msk.msra.mxu1 %vm283_vm0, %v1859_v15  ;;  %1964 = vmatpush.msk.msra.mxu0 %vm283_vm0, %v1963_v16  ;;  %v2209_v19 = vld [vmem:[%s2150_s7 + $0xa9] sm:$0xff]  ;;  %v218_v20 = vld [vmem:[%s2150_s7 + $0x19] sm:$0xff]  ;;  %v2226_v23 = vld [vmem:[%s2150_s7 + $0xb1] sm:$0xff] }
  0x1a   : > { %v219_v24 = vld [vmem:[%s2150_s7 + $0x21] sm:$0xff]  ;;  %v1775_v27 = vld [vmem:[%s2150_s7 + $0x18] sm:$0xff]  ;;  %v469_v29 = vld [vmem:[%s2150_s7 + $0xa] sm:$0xff] }
  0x1b   : > { %v199_v25 = vld [vmem:[%s2150_s7] sm:$0xff]  ;;  %v200_v28 = vld [vmem:[%s2150_s7 + $0x8] sm:$0xff]  ;;  %v2254_v32 = vld [vmem:[%s2150_s7 + $0x30] sm:$0xff] }
  0x1c   : > { %v468_v26 = vld [vmem:[%s2150_s7 + $0x2] sm:$0xff]  ;;  %v2251_v31 = vld [vmem:[%s2150_s7 + $0x1a] sm:$0xff]  ;;  %v2277_v35 = vld [vmem:[%s2150_s7 + $0x32] sm:$0xff] }
  0x1d   : > { %v1776_v30 = vld [vmem:[%s2150_s7 + $0x20] sm:$0xff]  ;;  %v2267_v34 = vld [vmem:[%s2150_s7 + $0x38] sm:$0xff]  ;;  %v2280_v36 = vld [vmem:[%s2150_s7 + $0x48] sm:$0xff] }
  0x1e   : > { %1727 = vmatmul.msk.f32.gmra.mxu1 %vm234_vm1, %v2173_v10  ;;  %1731 = vmatmul.msk.f32.gmra.mxu2 %vm234_vm1, %v2176_v11  ;;  %v2264_v33 = vld [vmem:[%s2150_s7 + $0x22] sm:$0xff]  ;;  %v2291_v37 = vld [vmem:[%s2150_s7 + $0x3a] sm:$0xff]  ;;  %v2294_v38 = vld [vmem:[%s2150_s7 + $0x50] sm:$0xff] }
  0x1f   : > { %1735 = vmatmul.msk.f32.gmra.mxu3 %vm234_vm1, %v2183_v13  ;;  %1723 = vmatmul.msk.f32.gmra.mxu0 %vm234_vm1, %v217_v14  ;;  %v2305_v39 = vld [vmem:[%s2150_s7 + $0x4a] sm:$0xff]  ;;  %v2308_v40 = vld [vmem:[%s2150_s7 + $0x60] sm:$0xff]  ;;  %v2319_v41 = vld [vmem:[%s2150_s7 + $0x52] sm:$0xff] }
  0x20   : > { %v2322_v42 = vld [vmem:[%s2150_s7 + $0x68] sm:$0xff]  ;;  %v2336_v44 = vld [vmem:[%s2150_s7 + $0x78] sm:$0xff]  ;;  %v2350_v46 = vld [vmem:[%s2150_s7 + $0x80] sm:$0xff] }
  0x21   : > { %v2333_v43 = vld [vmem:[%s2150_s7 + $0x62] sm:$0xff]  ;;  %v2347_v45 = vld [vmem:[%s2150_s7 + $0x6a] sm:$0xff]  ;;  %v2361_v47 = vld [vmem:[%s2150_s7 + $0x7a] sm:$0xff] }
  0x22   : > { %v2364_v48 = vld [vmem:[%s2150_s7 + $0x90] sm:$0xff]  ;;  %v2375_v49 = vld [vmem:[%s2150_s7 + $0x82] sm:$0xff]  ;;  %v2378_v50 = vld [vmem:[%s2150_s7 + $0x98] sm:$0xff] }
  0x23   : > { %v2391_v52 = vld [vmem:[%s2150_s7 + $0x92] sm:$0xff]  ;;  %v2394_v53 = vld [vmem:[%s2150_s7 + $0xa8] sm:$0xff]  ;;  %v2411_v58 = vld [vmem:[%s2150_s7 + $0x9a] sm:$0xff] }
  0x24   : > { %v2414_v59 = vld [vmem:[%s2150_s7 + $0xb0] sm:$0xff]  ;;  %v2434_v1 = vld [vmem:[%s2150_s7 + $0xc0] sm:$0xff]  ;;  %v2457_v14 = vld [vmem:[%s2150_s7 + $0xc8] sm:$0xff] }
  0x25   : > { %v2431_v0 = vld [vmem:[%s2150_s7 + $0xaa] sm:$0xff]  ;;  %v2437_v3 = vld [vmem:[%s2150_s7 + $0xc1] sm:$0xff]  ;;  %v2454_v12 = vld [vmem:[%s2150_s7 + $0xb2] sm:$0xff] }
  0x26   : > { %1728 = vmatmul.msk.f32.gmra.mxu1 %vm234_vm1, %v2203_v17  ;;  %1732 = vmatmul.msk.f32.gmra.mxu2 %vm234_vm1, %v2206_v18  ;;  %v2460_v16 = vld [vmem:[%s2150_s7 + $0xc9] sm:$0xff] }
  0x27   : > { %1736 = vmatmul.msk.f32.gmra.mxu3 %vm234_vm1, %v2209_v19  ;;  %1724 = vmatmul.msk.f32.gmra.mxu0 %vm234_vm1, %v218_v20  ;;  %2742 = vst [vmem:[#allocation4_spill] sm:$0xff] %v2460_v16 }
  0x2e   : > { %1729 = vmatmul.msk.f32.gmra.mxu1 %vm234_vm1, %v2220_v21  ;;  %1733 = vmatmul.msk.f32.gmra.mxu2 %vm234_vm1, %v2223_v22 }
  0x2f   : > { %1737 = vmatmul.msk.f32.gmra.mxu3 %vm234_vm1, %v2226_v23  ;;  %1725 = vmatmul.msk.f32.gmra.mxu0 %vm234_vm1, %v219_v24 }
  0x36   : > { %1739 = vmatmul.msk.f32.vlgmr.msrb.gmra.mxu1 %vm234_vm1, %v199_v25  ;;  %1757 = vmatmul.msk.f32.vlgmr.msrb.gmra.mxu2 %vm234_vm1, %v468_v26 }
  0x37   : > { %1793 = vmatmul.msk.f32.vlgmr.msrb.gmra.mxu3 %vm234_vm1, %v1775_v27  ;;  %1827 = vmatmul.msk.f32.vlgmr.msrb.gmra.mxu0 %vm234_vm1, %v218_v20 }
  0x3e   : > { %1740 = vmatmul.msk.f32.gmra.mxu1 %vm234_vm1, %v200_v28  ;;  %1758 = vmatmul.msk.f32.gmra.mxu2 %vm234_vm1, %v469_v29 }
  0x3f   : > { %1794 = vmatmul.msk.f32.gmra.mxu3 %vm234_vm1, %v1776_v30  ;;  %1828 = vmatmul.msk.f32.gmra.mxu0 %vm234_vm1, %v219_v24 }
  0x46   : > { %1741 = vmatmul.msk.f32.gmra.mxu1 %vm234_vm1, %v1775_v27  ;;  %1759 = vmatmul.msk.f32.gmra.mxu2 %vm234_vm1, %v2251_v31 }
  0x47   : > { %1795 = vmatmul.msk.f32.gmra.mxu3 %vm234_vm1, %v2254_v32  ;;  %1829 = vmatmul.msk.f32.gmra.mxu0 %vm234_vm1, %v2153_v5 }
  0x4e   : > { %1742 = vmatmul.msk.f32.gmra.mxu1 %vm234_vm1, %v1776_v30  ;;  %1760 = vmatmul.msk.f32.gmra.mxu2 %vm234_vm1, %v2264_v33 }
  0x4f   : > { %1796 = vmatmul.msk.f32.gmra.mxu3 %vm234_vm1, %v2267_v34  ;;  %1830 = vmatmul.msk.f32.gmra.mxu0 %vm234_vm1, %v2173_v10 }
  0x56   : > { %1743 = vmatmul.msk.f32.gmra.mxu1 %vm234_vm1, %v2254_v32  ;;  %1761 = vmatmul.msk.f32.gmra.mxu2 %vm234_vm1, %v2277_v35 }
  0x57   : > { %1797 = vmatmul.msk.f32.gmra.mxu3 %vm234_vm1, %v2280_v36  ;;  %1831 = vmatmul.msk.f32.gmra.mxu0 %vm234_vm1, %v2203_v17 }
  0x5e   : > { %1744 = vmatmul.msk.f32.gmra.mxu1 %vm234_vm1, %v2267_v34  ;;  %1762 = vmatmul.msk.f32.gmra.mxu2 %vm234_vm1, %v2291_v37 }
  0x5f   : > { %1798 = vmatmul.msk.f32.gmra.mxu3 %vm234_vm1, %v2294_v38  ;;  %1832 = vmatmul.msk.f32.gmra.mxu0 %vm234_vm1, %v2220_v21 }
  0x66   : > { %1745 = vmatmul.msk.f32.gmra.mxu1 %vm234_vm1, %v2280_v36  ;;  %1763 = vmatmul.msk.f32.gmra.mxu2 %vm234_vm1, %v2305_v39 }
  0x67   : > { %1799 = vmatmul.msk.f32.gmra.mxu3 %vm234_vm1, %v2308_v40  ;;  %1833 = vmatmul.msk.f32.gmra.mxu0 %vm234_vm1, %v2156_v6 }
  0x6e   : > { %1746 = vmatmul.msk.f32.gmra.mxu1 %vm234_vm1, %v2294_v38  ;;  %1764 = vmatmul.msk.f32.gmra.mxu2 %vm234_vm1, %v2319_v41 }
  0x6f   : > { %1800 = vmatmul.msk.f32.gmra.mxu3 %vm234_vm1, %v2322_v42  ;;  %1834 = vmatmul.msk.f32.gmra.mxu0 %vm234_vm1, %v2176_v11 }
  0x76   : > { %1747 = vmatmul.msk.f32.gmra.mxu1 %vm234_vm1, %v2308_v40  ;;  %1765 = vmatmul.msk.f32.gmra.mxu2 %vm234_vm1, %v2333_v43 }
  0x77   : > { %1801 = vmatmul.msk.f32.gmra.mxu3 %vm234_vm1, %v2336_v44  ;;  %1835 = vmatmul.msk.f32.gmra.mxu0 %vm234_vm1, %v2206_v18 }
  0x7e   : > { %1748 = vmatmul.msk.f32.gmra.mxu1 %vm234_vm1, %v2322_v42  ;;  %1766 = vmatmul.msk.f32.gmra.mxu2 %vm234_vm1, %v2347_v45 }
  0x7f   : > { %1802 = vmatmul.msk.f32.gmra.mxu3 %vm234_vm1, %v2350_v46  ;;  %1836 = vmatmul.msk.f32.gmra.mxu0 %vm234_vm1, %v2223_v22 }
  0x86   : > { %1749 = vmatmul.msk.f32.gmra.mxu1 %vm234_vm1, %v2336_v44  ;;  %1767 = vmatmul.msk.f32.gmra.mxu2 %vm234_vm1, %v2361_v47 }
  0x87   : > { %1803 = vmatmul.msk.f32.gmra.mxu3 %vm234_vm1, %v2364_v48  ;;  %1837 = vmatmul.msk.f32.gmra.mxu0 %vm234_vm1, %v2159_v7 }
  0x8e   : > { %1750 = vmatmul.msk.f32.gmra.mxu1 %vm234_vm1, %v2350_v46  ;;  %1768 = vmatmul.msk.f32.gmra.mxu2 %vm234_vm1, %v2375_v49 }
  0x8f   : > { %1804 = vmatmul.msk.f32.gmra.mxu3 %vm234_vm1, %v2378_v50  ;;  %1838 = vmatmul.msk.f32.gmra.mxu0 %vm234_vm1, %v2183_v13 }
  0x93   : > { %v2388_v51 = vpop.f32.mrf.mxu1 }
  0x94   : > { %v304_v54 = vpop.f32.mrf.mxu0 }
  0x96   : > { %1751 = vmatmul.msk.f32.gmra.mxu1 %vm234_vm1, %v2364_v48  ;;  %1769 = vmatmul.msk.f32.gmra.mxu2 %vm234_vm1, %v2391_v52 }
  0x97   : > { %1805 = vmatmul.msk.f32.gmra.mxu3 %vm234_vm1, %v2394_v53  ;;  %1839 = vmatmul.msk.f32.gmra.mxu0 %vm234_vm1, %v2209_v19 }
  0x99   : > { %v2404_v55 = vpop.f32.mrf.mxu2 }
  0x9a   : > { %v2406_v56 = vpop.f32.mrf.mxu3 }
  0x9b   : > { %v2408_v57 = vpop.f32.mrf.mxu1 }
  0x9c   : > { %v307_v60 = vpop.f32.mrf.mxu0 }
  0x9e   : > { %1752 = vmatmul.msk.f32.gmra.mxu1 %vm234_vm1, %v2378_v50  ;;  %1770 = vmatmul.msk.f32.gmra.mxu2 %vm234_vm1, %v2411_v58 }
  0x9f   : > { %1806 = vmatmul.msk.f32.gmra.mxu3 %vm234_vm1, %v2414_v59  ;;  %1840 = vmatmul.msk.f32.gmra.mxu0 %vm234_vm1, %v2226_v23 }
  0xa1   : > { %v2424_v61 = vpop.f32.mrf.mxu2 }
  0xa2   : > { %v2426_v62 = vpop.f32.mrf.mxu3 }
  0xa3   : > { %2740 = vst [vmem:[#allocation2_spill] sm:$0xff] %v2426_v62  ;;  %v2428_v63 = vpop.f32.mrf.mxu1 }
  0xa4   : > { %v310_v2 = vpop.f32.mrf.mxu0 }
  0xa6   : > { %1753 = vmatmul.msk.f32.gmra.mxu1 %vm234_vm1, %v2394_v53  ;;  %1771 = vmatmul.msk.f32.gmra.mxu2 %vm234_vm1, %v2431_v0 }
  0xa7   : > { %1807 = vmatmul.msk.f32.gmra.mxu3 %vm234_vm1, %v2434_v1  ;;  %1841 = vmatmul.msk.f32.gmra.mxu0 %vm234_vm1, %v2437_v3 }
  0xa9   : > { %v2447_v4 = vpop.f32.mrf.mxu2 }
  0xaa   : > { %v2449_v8 = vpop.f32.mrf.mxu3 }
  0xab   : > { %2741 = vst [vmem:[#allocation3_spill] sm:$0xff] %v2449_v8  ;;  %v2451_v9 = vpop.f32.mrf.mxu1 }
  0xac   : > { %v313_v15 = vpop.f32.mrf.mxu0 }
  0xae   : > { %1754 = vmatmul.msk.f32.gmra.mxu1 %vm234_vm1, %v2414_v59  ;;  %1772 = vmatmul.msk.f32.gmra.mxu2 %vm234_vm1, %v2454_v12 }
  0xaf   : > { %1808 = vmatmul.msk.f32.gmra.mxu3 %vm234_vm1, %v2457_v14  ;;  %1842 = vmatmul.msk.f32.gmra.mxu0 %vm234_vm1, %v2460_v16 }
  0xb1   : > { %v2470_v20 = vpop.f32.mrf.mxu2 }
  0xb2   : > { %v2472_v24 = vpop.f32.mrf.mxu3 }
  0xb3   : > { %2743 = vst [vmem:[#allocation5_spill] sm:$0xff] %v2472_v24  ;;  %v420_v25 = vpop.f32.mrf.mxu1 }
  0xb4   : > { %v857_v26 = vpop.f32.mrf.mxu0  ;;  %v421_v27 = vadd.f32 %v420_v25, %v304_v54 }
  0xb6   : > { %1861 = vmatmul.msk.f32.vlgmr.msra.gmra.mxu1 %vm234_vm1, %v2251_v31  ;;  %1897 = vmatmul.msk.f32.vlgmr.msra.gmra.mxu2 %vm234_vm1, %v2254_v32 }
  0xb7   : > { %1931 = vmatmul.msk.f32.vlgmr.msra.gmra.mxu3 %vm234_vm1, %v2153_v5  ;;  %1965 = vmatmul.msk.f32.vlgmr.msra.gmra.mxu0 %vm234_vm1, %v2277_v35 }
  0xb9   : > { %v554_v28 = vpop.f32.mrf.mxu2 }
  0xba   : > { %v602_v29 = vadd.f32 %v554_v28, %v421_v27  ;;  %v707_v30 = vpop.f32.mrf.mxu3 }
  0xbb   : > { %v423_v8 = vpop.f32.mrf.mxu1 }
  0xbc   : > { %v755_v24 = vadd.f32 %v707_v30, %v602_v29  ;;  %v860_v62 = vpop.f32.mrf.mxu0  ;;  %v424_v5 = vadd.f32 %v423_v8, %v307_v60 }
  0xbe   : > { %v2482_v16 = vadd.f32 %v857_v26, %v755_v24  ;;  %1862 = vmatmul.msk.f32.gmra.mxu1 %vm234_vm1, %v2264_v33  ;;  %1898 = vmatmul.msk.f32.gmra.mxu2 %vm234_vm1, %v2267_v34 }
  0xbf   : > { %1932 = vmatmul.msk.f32.gmra.mxu3 %vm234_vm1, %v2173_v10  ;;  %1966 = vmatmul.msk.f32.gmra.mxu0 %vm234_vm1, %v2291_v37 }
  0xc1   : > { %v557_v31 = vpop.f32.mrf.mxu2 }
  0xc2   : > { %v603_v32 = vadd.f32 %v557_v31, %v424_v5  ;;  %v710_v54 = vpop.f32.mrf.mxu3 }
  0xc3   : > { %v426_v25 = vpop.f32.mrf.mxu1 }
  0xc4   : > { %v756_v27 = vadd.f32 %v710_v54, %v603_v32  ;;  %v863_v24 = vpop.f32.mrf.mxu0  ;;  %v427_v10 = vadd.f32 %v426_v25, %v310_v2 }
  0xc6   : > { %v2492_v26 = vadd.f32 %v860_v62, %v756_v27  ;;  %1863 = vmatmul.msk.f32.gmra.mxu1 %vm234_vm1, %v2277_v35  ;;  %1899 = vmatmul.msk.f32.gmra.mxu2 %vm234_vm1, %v2280_v36 }
  0xc7   : > { %1933 = vmatmul.msk.f32.gmra.mxu3 %vm234_vm1, %v2203_v17  ;;  %1967 = vmatmul.msk.f32.gmra.mxu0 %vm234_vm1, %v2305_v39 }
  0xc9   : > { %v560_v33 = vpop.f32.mrf.mxu2 }
  0xca   : > { %v604_v34 = vadd.f32 %v560_v33, %v427_v10  ;;  %v713_v60 = vpop.f32.mrf.mxu3 }
  0xcb   : > { %v429_v8 = vpop.f32.mrf.mxu1 }
  0xcc   : > { %v757_v28 = vadd.f32 %v713_v60, %v604_v34  ;;  %v866_v62 = vpop.f32.mrf.mxu0  ;;  %v430_v17 = vadd.f32 %v429_v8, %v313_v15 }
  0xce   : > { %v2502_v29 = vadd.f32 %v863_v24, %v757_v28  ;;  %1864 = vmatmul.msk.f32.gmra.mxu1 %vm234_vm1, %v2291_v37  ;;  %1900 = vmatmul.msk.f32.gmra.mxu2 %vm234_vm1, %v2294_v38 }
  0xcf   : > { %1934 = vmatmul.msk.f32.gmra.mxu3 %vm234_vm1, %v2220_v21  ;;  %1968 = vmatmul.msk.f32.gmra.mxu0 %vm234_vm1, %v2319_v41 }
  0xd1   : > { %v563_v35 = vpop.f32.mrf.mxu2 }
  0xd2   : > { %v605_v36 = vadd.f32 %v563_v35, %v430_v17  ;;  %v716_v2 = vpop.f32.mrf.mxu3 }
  0xd3   : > { %v432_v30 = vpop.f32.mrf.mxu1 }
  0xd4   : > { %v758_v5 = vadd.f32 %v716_v2, %v605_v36  ;;  %v869_v31 = vpop.f32.mrf.mxu0  ;;  %v433_v21 = vadd.f32 %v432_v30, %v2388_v51 }
  0xd6   : > { %v2512_v32 = vadd.f32 %v866_v62, %v758_v5  ;;  %1865 = vmatmul.msk.f32.gmra.mxu1 %vm234_vm1, %v2305_v39  ;;  %1901 = vmatmul.msk.f32.gmra.mxu2 %vm234_vm1, %v2308_v40 }
  0xd7   : > { %1935 = vmatmul.msk.f32.gmra.mxu3 %vm234_vm1, %v2156_v6  ;;  %1969 = vmatmul.msk.f32.gmra.mxu0 %vm234_vm1, %v2333_v43 }
  0xd9   : > { %v566_v37 = vpop.f32.mrf.mxu2 }
  0xda   : > { %v606_v38 = vadd.f32 %v566_v37, %v433_v21  ;;  %v719_v15 = vpop.f32.mrf.mxu3 }
  0xdb   : > { %v435_v54 = vpop.f32.mrf.mxu1 }
  0xdc   : > { %v759_v25 = vadd.f32 %v719_v15, %v606_v38  ;;  %v872_v27 = vpop.f32.mrf.mxu0  ;;  %v436_v6 = vadd.f32 %v435_v54, %v2408_v57 }
  0xde   : > { %v2523_v24 = vadd.f32 %v869_v31, %v759_v25  ;;  %1866 = vmatmul.msk.f32.gmra.mxu1 %vm234_vm1, %v2319_v41  ;;  %1902 = vmatmul.msk.f32.gmra.mxu2 %vm234_vm1, %v2322_v42 }
  0xdf   : > { %1936 = vmatmul.msk.f32.gmra.mxu3 %vm234_vm1, %v2176_v11  ;;  %1970 = vmatmul.msk.f32.gmra.mxu0 %vm234_vm1, %v2347_v45 }
  0xe1   : > { %v569_v39 = vpop.f32.mrf.mxu2 }
  0xe2   : > { %v607_v40 = vadd.f32 %v569_v39, %v436_v6  ;;  %v722_v51 = vpop.f32.mrf.mxu3 }
  0xe3   : > { %v438_v10 = vpop.f32.mrf.mxu1 }
  0xe4   : > { %v760_v33 = vadd.f32 %v722_v51, %v607_v40  ;;  %v875_v34 = vpop.f32.mrf.mxu0  ;;  %v439_v11 = vadd.f32 %v438_v10, %v2428_v63 }
  0xe6   : > { %v2534_v60 = vadd.f32 %v872_v27, %v760_v33  ;;  %1867 = vmatmul.msk.f32.gmra.mxu1 %vm234_vm1, %v2333_v43  ;;  %1903 = vmatmul.msk.f32.gmra.mxu2 %vm234_vm1, %v2336_v44 }
  0xe7   : > { %1937 = vmatmul.msk.f32.gmra.mxu3 %vm234_vm1, %v2206_v18  ;;  %1971 = vmatmul.msk.f32.gmra.mxu0 %vm234_vm1, %v2361_v47 }
  0xe9   : > { %v572_v41 = vpop.f32.mrf.mxu2 }
  0xea   : > { %v608_v42 = vadd.f32 %v572_v41, %v439_v11  ;;  %v725_v57 = vpop.f32.mrf.mxu3 }
  0xeb   : > { %v441_v8 = vpop.f32.mrf.mxu1 }
  0xec   : > { %v761_v28 = vadd.f32 %v725_v57, %v608_v42  ;;  %v878_v62 = vpop.f32.mrf.mxu0  ;;  %v442_v18 = vadd.f32 %v441_v8, %v2451_v9 }
  0xee   : > { %v2545_v17 = vadd.f32 %v875_v34, %v761_v28  ;;  %1868 = vmatmul.msk.f32.gmra.mxu1 %vm234_vm1, %v2347_v45  ;;  %1904 = vmatmul.msk.f32.gmra.mxu2 %vm234_vm1, %v2350_v46  ;;  %v1959_v34 = vld [vmem:[%s2150_s7 + $0xc2] sm:$0xff] }
  0xef   : > { %1938 = vmatmul.msk.f32.gmra.mxu3 %vm234_vm1, %v2223_v22  ;;  %1972 = vmatmul.msk.f32.gmra.mxu0 %vm234_vm1, %v2375_v49 }
  0xf1   : > { %v575_v43 = vpop.f32.mrf.mxu2 }
  0xf2   : > { %v609_v44 = vadd.f32 %v575_v43, %v442_v18  ;;  %v728_v63 = vpop.f32.mrf.mxu3 }
  0xf3   : > { %v444_v35 = vpop.f32.mrf.mxu1 }
  0xf4   : > { %v762_v36 = vadd.f32 %v728_v63, %v609_v44  ;;  %v881_v2 = vpop.f32.mrf.mxu0  ;;  %v445_v22 = vadd.f32 %v444_v35, %v2404_v55  ;;  %v1893_v44 = vld [vmem:[%s2150_s7 + $0xd8] sm:$0xff] }
  0xf5   : > { %v1927_v35 = vld [vmem:[%s2150_s7 + $0xd9] sm:$0xff] }
  0xf6   : > { %v2556_v30 = vadd.f32 %v878_v62, %v762_v36  ;;  %1869 = vmatmul.msk.f32.gmra.mxu1 %vm234_vm1, %v2361_v47  ;;  %1905 = vmatmul.msk.f32.gmra.mxu2 %vm234_vm1, %v2364_v48  ;;  %v1961_v36 = vld [vmem:[%s2150_s7 + $0xda] sm:$0xff] }
  0xf7   : > { %1939 = vmatmul.msk.f32.gmra.mxu3 %vm234_vm1, %v2159_v7  ;;  %1973 = vmatmul.msk.f32.gmra.mxu0 %vm234_vm1, %v2391_v52 }
  0xf9   : > { %v578_v45 = vpop.f32.mrf.mxu2 }
  0xfa   : > { %v610_v46 = vadd.f32 %v578_v45, %v445_v22  ;;  %v731_v9 = vpop.f32.mrf.mxu3 }
  0xfb   : > { %v447_v5 = vpop.f32.mrf.mxu1 }
  0xfc   : > { %v763_v31 = vadd.f32 %v731_v9, %v610_v46  ;;  %v884_v21 = vpop.f32.mrf.mxu0  ;;  %v448_v7 = vadd.f32 %v447_v5, %v2424_v61 }
  0xfe   : > { %v2567_v37 = vadd.f32 %v881_v2, %v763_v31  ;;  %1870 = vmatmul.msk.f32.gmra.mxu1 %vm234_vm1, %v2375_v49  ;;  %1906 = vmatmul.msk.f32.gmra.mxu2 %vm234_vm1, %v2378_v50  ;;  %v2746_v2 = vld [vmem:[#allocation3_spill] sm:$0xff]  ;;  %v1894_v31 = vld [vmem:[%s2150_s7 + $0xe0] sm:$0xff] }
  0xff   : > { %1940 = vmatmul.msk.f32.gmra.mxu3 %vm234_vm1, %v2183_v13  ;;  %1974 = vmatmul.msk.f32.gmra.mxu0 %vm234_vm1, %v2411_v58 }
 0x101   : > { %v581_v47 = vpop.f32.mrf.mxu2 }
 0x102   : > { %v611_v48 = vadd.f32 %v581_v47, %v448_v7  ;;  %v734_v55 = vpop.f32.mrf.mxu3  ;;  %v1928_v7 = vld [vmem:[%s2150_s7 + $0xe1] sm:$0xff] }
 0x103   : > { %v450_v38 = vpop.f32.mrf.mxu1 }
 0x104   : > { %v764_v15 = vadd.f32 %v734_v55, %v611_v48  ;;  %v887_v54 = vpop.f32.mrf.mxu0  ;;  %v451_v13 = vadd.f32 %v450_v38, %v2447_v4  ;;  %v1962_v48 = vld [vmem:[%s2150_s7 + $0xe2] sm:$0xff]  ;;  %v2747_v38 = vld [vmem:[#allocation5_spill] sm:$0xff] }
 0x106   : > { %v2578_v25 = vadd.f32 %v884_v21, %v764_v15  ;;  %1871 = vmatmul.msk.f32.gmra.mxu1 %vm234_vm1, %v2391_v52  ;;  %1907 = vmatmul.msk.f32.gmra.mxu2 %vm234_vm1, %v2394_v53 }
 0x107   : > { %1941 = vmatmul.msk.f32.gmra.mxu3 %vm234_vm1, %v2209_v19  ;;  %1975 = vmatmul.msk.f32.gmra.mxu0 %vm234_vm1, %v2431_v0 }
 0x109   : > { %v584_v49 = vpop.f32.mrf.mxu2 }
 0x10a   : > { %v612_v50 = vadd.f32 %v584_v49, %v451_v13  ;;  %v737_v61 = vpop.f32.mrf.mxu3 }
 0x10b   : > { %v453_v27 = vpop.f32.mrf.mxu1 }
 0x10c   : > { %v765_v6 = vadd.f32 %v737_v61, %v612_v50  ;;  %v890_v39 = vpop.f32.mrf.mxu0  ;;  %v454_v19 = vadd.f32 %v453_v27, %v2470_v20 }
 0x10e   : > { %v2589_v40 = vadd.f32 %v887_v54, %v765_v6  ;;  %1872 = vmatmul.msk.f32.gmra.mxu1 %vm234_vm1, %v2411_v58  ;;  %1908 = vmatmul.msk.f32.gmra.mxu2 %vm234_vm1, %v2414_v59 }
 0x10f   : > { %1942 = vmatmul.msk.f32.gmra.mxu3 %vm234_vm1, %v2226_v23  ;;  %1976 = vmatmul.msk.f32.gmra.mxu0 %vm234_vm1, %v2454_v12 }
 0x111   : > { %v587_v52 = vpop.f32.mrf.mxu2 }
 0x112   : > { %v613_v53 = vadd.f32 %v587_v52, %v454_v19  ;;  %v740_v4 = vpop.f32.mrf.mxu3 }
 0x113   : > { %v456_v51 = vpop.f32.mrf.mxu1 }
 0x114   : > { %v766_v10 = vadd.f32 %v740_v4, %v613_v53  ;;  %v893_v33 = vpop.f32.mrf.mxu0  ;;  %v457_v23 = vadd.f32 %v456_v51, %v2406_v56  ;;  %v2745_v56 = vld [vmem:[#allocation2_spill] sm:$0xff] }
 0x116   : > { %v2601_v58 = vadd.f32 %v890_v39, %v766_v10  ;;  %1873 = vmatmul.msk.f32.gmra.mxu1 %vm234_vm1, %v2431_v0  ;;  %1909 = vmatmul.msk.f32.gmra.mxu2 %vm234_vm1, %v2434_v1  ;;  %v1960_v0 = vld [vmem:[%s2150_s7 + $0xca] sm:$0xff]  ;;  %v2650_v10 = vld [vmem:[%s2737_s2] ss:$0 sm:$0xff] }
 0x117   : > { %1943 = vmatmul.msk.f32.gmra.mxu3 %vm234_vm1, %v2437_v3  ;;  %1977 = vmatmul.msk.f32.gmra.mxu0 %vm234_vm1, %v1959_v34  ;;  %v2744_v1 = vld [vmem:[#allocation4_spill] sm:$0xff] }
 0x119   : > { %v590_v59 = vpop.f32.mrf.mxu2 }
 0x11a   : > { %v614_v20 = vadd.f32 %v590_v59, %v457_v23  ;;  %v743_v11 = vpop.f32.mrf.mxu3 }
 0x11b   : > { %v459_v41 = vpop.f32.mrf.mxu1 }
 0x11c   : > { %v767_v42 = vadd.f32 %v743_v11, %v614_v20  ;;  %v896_v57 = vpop.f32.mrf.mxu0  ;;  %v460_v3 = vadd.f32 %v459_v41, %v2745_v56 }
 0x11e   : > { %v2612_v8 = vadd.f32 %v893_v33, %v767_v42  ;;  %1874 = vmatmul.msk.f32.gmra.mxu1 %vm234_vm1, %v2454_v12  ;;  %1910 = vmatmul.msk.f32.gmra.mxu2 %vm234_vm1, %v2457_v14 }
 0x11f   : > { %1944 = vmatmul.msk.f32.gmra.mxu3 %vm234_vm1, %v2744_v1  ;;  %1978 = vmatmul.msk.f32.gmra.mxu0 %vm234_vm1, %v1960_v0 }
 0x121   : > { %v593_v28 = vpop.f32.mrf.mxu2 }
 0x122   : > { %v615_v62 = vadd.f32 %v593_v28, %v460_v3  ;;  %v746_v18 = vpop.f32.mrf.mxu3 }
 0x123   : > { %v462_v43 = vpop.f32.mrf.mxu1 }
 0x124   : > { %v768_v63 = vadd.f32 %v746_v18, %v615_v62  ;;  %v899_v12 = vpop.f32.mrf.mxu0  ;;  %v463_v22 = vadd.f32 %v462_v43, %v2746_v2 }
 0x126   : > { %v2625_v14 = vadd.f32 %v896_v57, %v768_v63  ;;  %1875 = vmatmul.msk.f32.gmra.mxu1 %vm234_vm1, %v1959_v34  ;;  %1911 = vmatmul.msk.f32.gmra.mxu2 %vm234_vm1, %v1893_v44 }
 0x127   : > { %1945 = vmatmul.msk.f32.gmra.mxu3 %vm234_vm1, %v1927_v35  ;;  %1979 = vmatmul.msk.f32.gmra.mxu0 %vm234_vm1, %v1961_v36 }
 0x129   : > { %v596_v45 = vpop.f32.mrf.mxu2 }
 0x12a   : > { %v616_v46 = vadd.f32 %v596_v45, %v463_v22  ;;  %v749_v9 = vpop.f32.mrf.mxu3 }
 0x12b   : > { %v465_v5 = vpop.f32.mrf.mxu1 }
 0x12c   : > { %v769_v21 = vadd.f32 %v749_v9, %v616_v46  ;;  %v902_v47 = vpop.f32.mrf.mxu0  ;;  %v466_v15 = vadd.f32 %v465_v5, %v2747_v38 }
 0x12e   : > { %v2635_v55 = vadd.f32 %v899_v12, %v769_v21  ;;  %1876 = vmatmul.msk.f32.gmra.mxu1 %vm234_vm1, %v1960_v0  ;;  %1912 = vmatmul.msk.f32.gmra.mxu2 %vm234_vm1, %v1894_v31 }
 0x12f   : > { %1946 = vmatmul.msk.f32.gmra.mxu3 %vm234_vm1, %v1928_v7  ;;  %1980 = vmatmul.msk.f32.gmra.mxu0 %vm234_vm1, %v1962_v48 }
 0x131   : > { %v599_v54 = vpop.f32.mrf.mxu2 }
 0x132   : > { %v617_v13 = vadd.f32 %v599_v54, %v466_v15  ;;  %v752_v49 = vpop.f32.mrf.mxu3 }
 0x133   : > { %v1007_v50 = vpop.f32.mrf.mxu1 }
 0x134   : > { %v770_v61 = vadd.f32 %v752_v49, %v617_v13  ;;  %v1460_v27 = vpop.f32.mrf.mxu0  ;;  %v1055_v39 = vadd.f32 %v1007_v50, %v2482_v16 }
 0x136   : > { %v2643_v6 = vadd.f32 %v902_v47, %v770_v61 }
 0x139   : > { %v1160_v19 = vpop.f32.mrf.mxu2 }
 0x13a   : > { %v1208_v52 = vadd.f32 %v1160_v19, %v1055_v39  ;;  %v1310_v53 = vpop.f32.mrf.mxu3 }
 0x13b   : > { %v1010_v4 = vpop.f32.mrf.mxu1 }
 0x13c   : > { %v1358_v51 = vadd.f32 %v1310_v53, %v1208_v52  ;;  %v1463_v33 = vpop.f32.mrf.mxu0  ;;  %v1056_v23 = vadd.f32 %v1010_v4, %v2492_v26 }
 0x13e   : > { %v1508_v34 = vadd.f32 %v1460_v27, %v1358_v51 }
 0x140   : > { %v1528_v16 = vadd.f32 %v2650_v10, %v1508_v34 }
 0x141   : > { %v1163_v59 = vpop.f32.mrf.mxu2 }
 0x142   : > { %vm1544_vm2 = vcmp.ge.f32.partialorder %v1528_v16, 0.0  ;;  %v1560_v20 = vmul.f32 0.2, %v1528_v16  ;;  %v1209_v11 = vadd.f32 %v1163_v59, %v1056_v23  ;;  %v1313_v41 = vpop.f32.mrf.mxu3 }
 0x143   : > { %v1013_v42 = vpop.f32.mrf.mxu1 }
 0x144   : > { %v1576_v57 = vsel %vm1544_vm2, %v1528_v16, %v1560_v20  ;;  %v1359_v0 = vadd.f32 %v1313_v41, %v1209_v11  ;;  %v1466_v1 = vpop.f32.mrf.mxu0  ;;  %v1057_v56 = vadd.f32 %v1013_v42, %v2502_v29 }
 0x145   : > { %1592 = vst.msk [vmem:[%s2657_s30] sm:$0xff] %vm234_vm1, %v1576_v57 }
 0x146   : > { %v1509_v26 = vadd.f32 %v1463_v33, %v1359_v0 }
 0x148   : > { %v1529_v3 = vadd.f32 %v2650_v10, %v1509_v26 }
 0x149   : > { %v1166_v28 = vpop.f32.mrf.mxu2 }
 0x14a   : > { %vm1545_vm3 = vcmp.ge.f32.partialorder %v1529_v3, 0.0  ;;  %v1561_v62 = vmul.f32 0.2, %v1529_v3  ;;  %v1210_v18 = vadd.f32 %v1166_v28, %v1057_v56  ;;  %v1316_v43 = vpop.f32.mrf.mxu3 }
 0x14b   : > { %v1016_v44 = vpop.f32.mrf.mxu1 }
 0x14c   : > { %v1577_v63 = vsel %vm1545_vm3, %v1529_v3, %v1561_v62  ;;  %v1360_v35 = vadd.f32 %v1316_v43, %v1210_v18  ;;  %v1469_v12 = vpop.f32.mrf.mxu0  ;;  %v1058_v2 = vadd.f32 %v1016_v44, %v2512_v32 }
 0x14d   : > { %1593 = vst.msk [vmem:[%s2657_s30 + $0x8] sm:$0xff] %vm234_vm1, %v1577_v63 }
 0x14e   : > { %v1510_v36 = vadd.f32 %v1466_v1, %v1360_v35 }
 0x150   : > { %v1530_v22 = vadd.f32 %v2650_v10, %v1510_v36 }
 0x151   : > { %v1169_v29 = vpop.f32.mrf.mxu2 }
 0x152   : > { %vm1546_vm4 = vcmp.ge.f32.partialorder %v1530_v22, 0.0  ;;  %v1562_v45 = vmul.f32 0.2, %v1530_v22  ;;  %v1211_v46 = vadd.f32 %v1169_v29, %v1058_v2  ;;  %v1319_v9 = vpop.f32.mrf.mxu3 }
 0x153   : > { %v1019_v5 = vpop.f32.mrf.mxu1 }
 0x154   : > { %v1578_v31 = vsel %vm1546_vm4, %v1530_v22, %v1562_v45  ;;  %v1361_v21 = vadd.f32 %v1319_v9, %v1211_v46  ;;  %v1472_v7 = vpop.f32.mrf.mxu0  ;;  %v1059_v48 = vadd.f32 %v1019_v5, %v2523_v24 }
 0x155   : > { %1594 = vst.msk [vmem:[%s2657_s30 + $0x10] sm:$0xff] %vm234_vm1, %v1578_v31 }
 0x156   : > { %v1511_v47 = vadd.f32 %v1469_v12, %v1361_v21 }
 0x158   : > { %v1531_v38 = vadd.f32 %v2650_v10, %v1511_v47 }
 0x159   : > { %v1172_v32 = vpop.f32.mrf.mxu2 }
 0x15a   : > { %vm1547_vm5 = vcmp.ge.f32.partialorder %v1531_v38, 0.0  ;;  %v1563_v15 = vmul.f32 0.2, %v1531_v38  ;;  %v1212_v54 = vadd.f32 %v1172_v32, %v1059_v48  ;;  %v1322_v13 = vpop.f32.mrf.mxu3 }
 0x15b   : > { %v1022_v49 = vpop.f32.mrf.mxu1 }
 0x15c   : > { %v1579_v50 = vsel %vm1547_vm5, %v1531_v38, %v1563_v15  ;;  %v1362_v61 = vadd.f32 %v1322_v13, %v1212_v54  ;;  %v1475_v27 = vpop.f32.mrf.mxu0  ;;  %v1060_v19 = vadd.f32 %v1022_v49, %v2534_v60 }
 0x15d   : > { %1595 = vst.msk [vmem:[%s2657_s30 + $0x18] sm:$0xff] %vm234_vm1, %v1579_v50 }
 0x15e   : > { %v1512_v39 = vadd.f32 %v1472_v7, %v1362_v61 }
 0x160   : > { %v1532_v52 = vadd.f32 %v2650_v10, %v1512_v39 }
 0x161   : > { %v1175_v24 = vpop.f32.mrf.mxu2 }
 0x162   : > { %vm1548_vm6 = vcmp.ge.f32.partialorder %v1532_v52, 0.0  ;;  %v1564_v53 = vmul.f32 0.2, %v1532_v52  ;;  %v1213_v4 = vadd.f32 %v1175_v24, %v1060_v19  ;;  %v1325_v51 = vpop.f32.mrf.mxu3 }
 0x163   : > { %v1025_v33 = vpop.f32.mrf.mxu1 }
 0x164   : > { %v1580_v34 = vsel %vm1548_vm6, %v1532_v52, %v1564_v53  ;;  %v1363_v23 = vadd.f32 %v1325_v51, %v1213_v4  ;;  %v1478_v16 = vpop.f32.mrf.mxu0  ;;  %v1061_v20 = vadd.f32 %v1025_v33, %v2545_v17 }
 0x165   : > { %1596 = vst.msk [vmem:[%s2657_s30 + $0x20] sm:$0xff] %vm234_vm1, %v1580_v34 }
 0x166   : > { %v1513_v59 = vadd.f32 %v1475_v27, %v1363_v23 }
 0x168   : > { %v1533_v11 = vadd.f32 %v2650_v10, %v1513_v59 }
 0x169   : > { %v1178_v60 = vpop.f32.mrf.mxu2 }
 0x16a   : > { %vm1549_vm7 = vcmp.ge.f32.partialorder %v1533_v11, 0.0  ;;  %v1565_v41 = vmul.f32 0.2, %v1533_v11  ;;  %v1214_v42 = vadd.f32 %v1178_v60, %v1061_v20  ;;  %v1328_v57 = vpop.f32.mrf.mxu3 }
 0x16b   : > { %v1028_v0 = vpop.f32.mrf.mxu1 }
 0x16c   : > { %v1581_v1 = vsel %vm1549_vm7, %v1533_v11, %v1565_v41  ;;  %v1364_v26 = vadd.f32 %v1328_v57, %v1214_v42  ;;  %v1481_v56 = vpop.f32.mrf.mxu0  ;;  %v1062_v28 = vadd.f32 %v1028_v0, %v2556_v30 }
 0x16d   : > { %1597 = vst.msk [vmem:[%s2657_s30 + $0x28] sm:$0xff] %vm234_vm1, %v1581_v1 }
 0x16e   : > { %v1514_v3 = vadd.f32 %v1478_v16, %v1364_v26 }
 0x170   : > { %v1534_v62 = vadd.f32 %v2650_v10, %v1514_v3 }
 0x171   : > { %v1181_v17 = vpop.f32.mrf.mxu2 }
 0x172   : > { %vm1550_vm8 = vcmp.ge.f32.partialorder %v1534_v62, 0.0  ;;  %v1566_v18 = vmul.f32 0.2, %v1534_v62  ;;  %v1215_v43 = vadd.f32 %v1181_v17, %v1062_v28  ;;  %v1331_v44 = vpop.f32.mrf.mxu3 }
 0x173   : > { %v1031_v63 = vpop.f32.mrf.mxu1 }
 0x174   : > { %v1582_v35 = vsel %vm1550_vm8, %v1534_v62, %v1566_v18  ;;  %v1365_v12 = vadd.f32 %v1331_v44, %v1215_v43  ;;  %v1484_v36 = vpop.f32.mrf.mxu0  ;;  %v1063_v22 = vadd.f32 %v1031_v63, %v2567_v37 }
 0x175   : > { %1598 = vst.msk [vmem:[%s2657_s30 + $0x30] sm:$0xff] %vm234_vm1, %v1582_v35 }
 0x176   : > { %v1515_v2 = vadd.f32 %v1481_v56, %v1365_v12 }
 0x178   : > { %v1535_v29 = vadd.f32 %v2650_v10, %v1515_v2 }
 0x179   : > { %v1184_v30 = vpop.f32.mrf.mxu2 }
 0x17a   : > { %vm1551_vm9 = vcmp.ge.f32.partialorder %v1535_v29, 0.0  ;;  %v1567_v45 = vmul.f32 0.2, %v1535_v29  ;;  %v1216_v46 = vadd.f32 %v1184_v30, %v1063_v22  ;;  %v1334_v9 = vpop.f32.mrf.mxu3 }
 0x17b   : > { %v1034_v5 = vpop.f32.mrf.mxu1 }
 0x17c   : > { %v1583_v31 = vsel %vm1551_vm9, %v1535_v29, %v1567_v45  ;;  %v1366_v21 = vadd.f32 %v1334_v9, %v1216_v46  ;;  %v1487_v7 = vpop.f32.mrf.mxu0  ;;  %v1064_v48 = vadd.f32 %v1034_v5, %v2578_v25 }
 0x17d   : > { %1599 = vst.msk [vmem:[%s2657_s30 + $0x38] sm:$0xff] %vm234_vm1, %v1583_v31 }
 0x17e   : > { %v1516_v47 = vadd.f32 %v1484_v36, %v1366_v21 }
 0x180   : > { %v1536_v38 = vadd.f32 %v2650_v10, %v1516_v47 }
 0x181   : > { %v1187_v37 = vpop.f32.mrf.mxu2 }
 0x182   : > { %vm1552_vm10 = vcmp.ge.f32.partialorder %v1536_v38, 0.0  ;;  %v1568_v32 = vmul.f32 0.2, %v1536_v38  ;;  %v1217_v15 = vadd.f32 %v1187_v37, %v1064_v48  ;;  %v1337_v54 = vpop.f32.mrf.mxu3 }
 0x183   : > { %v1037_v13 = vpop.f32.mrf.mxu1 }
 0x184   : > { %v1584_v49 = vsel %vm1552_vm10, %v1536_v38, %v1568_v32  ;;  %v1367_v50 = vadd.f32 %v1337_v54, %v1217_v15  ;;  %v1490_v61 = vpop.f32.mrf.mxu0  ;;  %v1065_v39 = vadd.f32 %v1037_v13, %v2589_v40 }
 0x185   : > { %1600 = vst.msk [vmem:[%s2657_s30 + $0x40] sm:$0xff] %vm234_vm1, %v1584_v49 }
 0x186   : > { %v1517_v27 = vadd.f32 %v1487_v7, %v1367_v50 }
 0x188   : > { %v1537_v19 = vadd.f32 %v2650_v10, %v1517_v27 }
 0x189   : > { %v1190_v25 = vpop.f32.mrf.mxu2 }
 0x18a   : > { %vm1553_vm11 = vcmp.ge.f32.partialorder %v1537_v19, 0.0  ;;  %v1569_v52 = vmul.f32 0.2, %v1537_v19  ;;  %v1218_v24 = vadd.f32 %v1190_v25, %v1065_v39  ;;  %v1340_v53 = vpop.f32.mrf.mxu3 }
 0x18b   : > { %v1040_v4 = vpop.f32.mrf.mxu1 }
 0x18c   : > { %v1585_v51 = vsel %vm1553_vm11, %v1537_v19, %v1569_v52  ;;  %v1368_v33 = vadd.f32 %v1340_v53, %v1218_v24  ;;  %v1493_v34 = vpop.f32.mrf.mxu0  ;;  %v1066_v16 = vadd.f32 %v1040_v4, %v2601_v58 }
 0x18d   : > { %1601 = vst.msk [vmem:[%s2657_s30 + $0x48] sm:$0xff] %vm234_vm1, %v1585_v51 }
 0x18e   : > { %v1518_v23 = vadd.f32 %v1490_v61, %v1368_v33 }
 0x190   : > { %v1538_v59 = vadd.f32 %v2650_v10, %v1518_v23 }
 0x191   : > { %v1193_v40 = vpop.f32.mrf.mxu2 }
 0x192   : > { %vm1554_vm12 = vcmp.ge.f32.partialorder %v1538_v59, 0.0  ;;  %v1570_v20 = vmul.f32 0.2, %v1538_v59  ;;  %v1219_v11 = vadd.f32 %v1193_v40, %v1066_v16  ;;  %v1343_v60 = vpop.f32.mrf.mxu3 }
 0x193   : > { %v1043_v41 = vpop.f32.mrf.mxu1 }
 0x194   : > { %v1586_v42 = vsel %vm1554_vm12, %v1538_v59, %v1570_v20  ;;  %v1369_v57 = vadd.f32 %v1343_v60, %v1219_v11  ;;  %v1496_v0 = vpop.f32.mrf.mxu0  ;;  %v1067_v26 = vadd.f32 %v1043_v41, %v2612_v8 }
 0x195   : > { %1602 = vst.msk [vmem:[%s2657_s30 + $0x50] sm:$0xff] %vm234_vm1, %v1586_v42 }
 0x196   : > { %v1519_v1 = vadd.f32 %v1493_v34, %v1369_v57 }
 0x198   : > { %v1539_v56 = vadd.f32 %v2650_v10, %v1519_v1 }
 0x199   : > { %v1196_v58 = vpop.f32.mrf.mxu2 }
 0x19a   : > { %vm1555_vm13 = vcmp.ge.f32.partialorder %v1539_v56, 0.0  ;;  %v1571_v3 = vmul.f32 0.2, %v1539_v56  ;;  %v1220_v28 = vadd.f32 %v1196_v58, %v1067_v26  ;;  %v1346_v62 = vpop.f32.mrf.mxu3 }
 0x19b   : > { %v1046_v17 = vpop.f32.mrf.mxu1 }
 0x19c   : > { %v1587_v18 = vsel %vm1555_vm13, %v1539_v56, %v1571_v3  ;;  %v1370_v43 = vadd.f32 %v1346_v62, %v1220_v28  ;;  %v1499_v63 = vpop.f32.mrf.mxu0  ;;  %v1068_v35 = vadd.f32 %v1046_v17, %v2625_v14 }
 0x19d   : > { %1603 = vst.msk [vmem:[%s2657_s30 + $0x58] sm:$0xff] %vm234_vm1, %v1587_v18 }
 0x19e   : > { %v1520_v44 = vadd.f32 %v1496_v0, %v1370_v43 }
 0x1a0   : > { %v1540_v12 = vadd.f32 %v2650_v10, %v1520_v44 }
 0x1a1   : > { %v1199_v8 = vpop.f32.mrf.mxu2 }
 0x1a2   : > { %vm1556_vm14 = vcmp.ge.f32.partialorder %v1540_v12, 0.0  ;;  %v1572_v36 = vmul.f32 0.2, %v1540_v12  ;;  %v1221_v2 = vadd.f32 %v1199_v8, %v1068_v35  ;;  %v1349_v22 = vpop.f32.mrf.mxu3 }
 0x1a3   : > { %v1049_v29 = vpop.f32.mrf.mxu1 }
 0x1a4   : > { %v1588_v30 = vsel %vm1556_vm14, %v1540_v12, %v1572_v36  ;;  %v1371_v45 = vadd.f32 %v1349_v22, %v1221_v2  ;;  %v1069_v9 = vadd.f32 %v1049_v29, %v2635_v55  ;;  %v1502_v14 = vpop.f32.mrf.mxu0 }
 0x1a5   : > { %1604 = vst.msk [vmem:[%s2657_s30 + $0x60] sm:$0xff] %vm234_vm1, %v1588_v30 }
 0x1a6   : > { %v1521_v46 = vadd.f32 %v1499_v63, %v1371_v45 }
 0x1a8   : > { %v1541_v5 = vadd.f32 %v2650_v10, %v1521_v46 }
 0x1a9   : > { %v1202_v31 = vpop.f32.mrf.mxu2 }
 0x1aa   : > { %vm1557_vm15 = vcmp.ge.f32.partialorder %v1541_v5, 0.0  ;;  %v1573_v21 = vmul.f32 0.2, %v1541_v5  ;;  %v1222_v7 = vadd.f32 %v1202_v31, %v1069_v9  ;;  %v1352_v47 = vpop.f32.mrf.mxu3 }
 0x1ab   : > { %v1052_v37 = vpop.f32.mrf.mxu1 }
 0x1ac   : > { %v1589_v48 = vsel %vm1557_vm15, %v1541_v5, %v1573_v21  ;;  %v1372_v38 = vadd.f32 %v1352_v47, %v1222_v7  ;;  %v1070_v15 = vadd.f32 %v1052_v37, %v2643_v6  ;;  %v1505_v61 = vpop.f32.mrf.mxu0 }
 0x1ad   : > { %1605 = vst.msk [vmem:[%s2657_s30 + $0x68] sm:$0xff] %vm234_vm1, %v1589_v48 }
 0x1ae   : > { %v1522_v32 = vadd.f32 %v1502_v14, %v1372_v38 }
 0x1b0   : > { %v1542_v55 = vadd.f32 %v2650_v10, %v1522_v32 }
 0x1b1   : > { %v1205_v54 = vpop.f32.mrf.mxu2 }
 0x1b2   : > { %vm1558_vm0 = vcmp.ge.f32.partialorder %v1542_v55, 0.0  ;;  %v1574_v13 = vmul.f32 0.2, %v1542_v55  ;;  %v1223_v49 = vadd.f32 %v1205_v54, %v1070_v15  ;;  %v1355_v50 = vpop.f32.mrf.mxu3 }
 0x1b4   : > { %v1590_v27 = vsel %vm1558_vm0, %v1542_v55, %v1574_v13  ;;  %v1373_v39 = vadd.f32 %v1355_v50, %v1223_v49 }
 0x1b5   : > { %1606 = vst.msk [vmem:[%s2657_s30 + $0x70] sm:$0xff] %vm234_vm1, %v1590_v27 }
 0x1b6   : > { %v1523_v19 = vadd.f32 %v1505_v61, %v1373_v39 }
 0x1b8   : > { %v1543_v25 = vadd.f32 %v2650_v10, %v1523_v19 }
 0x1ba   : > { %vm1559_vm2 = vcmp.ge.f32.partialorder %v1543_v25, 0.0  ;;  %v1575_v52 = vmul.f32 0.2, %v1543_v25 }
 0x1bc   : > { %v1591_v24 = vsel %vm1559_vm2, %v1543_v25, %v1575_v52 }
 0x1bd   : > { %1607 = vst.msk [vmem:[%s2657_s30 + $0x78] sm:$0xff] %vm234_vm1, %v1591_v24 }
 0x1be PF: > { %s13_s16 = sadd.s32 1, %s2066_s16   ;;  %s2748_s12 = smov %s2058_s14 }
 0x1bf   : > { %p10_p7 = scmp.ge.s32.totalorder %s13_s16, 6   ;;  %s2749_s13 = smov %s2062_s15 }
 0x1c0   : > { %s2750_s14 = smov %s2753_s17  ;;  %s2751_s15 = smov %s2757_s18 }
 0x1c1   :  { %12 = sbr.rel (!%p10_p7) target bundleno = 3 (0x3), region = 73 }

</bundles_post_ra>
